<compile_context>
chip_gen: v7x
topology: tpu7x:2x2x1
jax: 0.10.0
libtpu: 0.0.40
codegen_flags: <defaults>
</compile_context>

<pallas_src>
import functools

import jax
import jax.numpy as jnp
from jax.experimental import pallas as pl
from jax.experimental.pallas import tpu as pltpu


def _round_up(x, m):
    return (x + m - 1) // m * m


# ---------------------------------------------------------------------------
# Kernels
# ---------------------------------------------------------------------------
def _linear_kernel_flat(x_ref, w_ref, b_ref, o_ref):
    """Collapsed-K variant: full contraction resident, 1-D grid over vocab."""
    acc = jnp.dot(x_ref[...], w_ref[...], preferred_element_type=jnp.float32)
    o_ref[...] = (acc + b_ref[...].astype(jnp.float32)).astype(o_ref.dtype)


def _linear_kernel_ktiled(x_ref, w_ref, b_ref, o_ref, acc_ref, *, tk):
    """K-tiled variant: f32 accumulator, bias folded into the k==0 init.

    x is kept VMEM-resident (constant block index); the K chunk is sliced
    in-kernel so x is never re-streamed across vocab tiles.
    """
    k = pl.program_id(1)

    @pl.when(k == 0)
    def _():
        acc_ref[...] = jnp.broadcast_to(
            b_ref[...].astype(jnp.float32), acc_ref.shape)

    kstart = pl.multiple_of(k * tk, 128)
    acc_ref[...] += jnp.dot(x_ref[:, pl.ds(kstart, tk)], w_ref[...],
                            preferred_element_type=jnp.float32)

    @pl.when(k == pl.num_programs(1) - 1)
    def _():
        o_ref[...] = acc_ref[...].astype(o_ref.dtype)


# ---------------------------------------------------------------------------
# Tile selection
# ---------------------------------------------------------------------------
def _tile_candidates(total, cap):
    """Multiples of 128 that divide `total` (descending), capped at `cap`."""
    cap = max(128, min(total, cap))
    divs = [d for d in range(128, cap + 1, 128) if total % d == 0]
    if not divs:
        divs = [128]
    return sorted(divs, reverse=True)


def _pick_tn(np128, cap):
    cands = _tile_candidates(np128, cap)
    # Prefer an even number of vocab tiles (v7x: 2 TensorCores share the
    # "parallel" axis) as long as it doesn't shrink the tile by more than 2x.
    even = [d for d in cands if (np128 // d) % 2 == 0]
    if even and 2 * even[0] >= cands[0]:
        return even[0]
    return cands[0]


def _vmem_bytes(bp, kp, tk, tn, w_isz, out_isz, collapsed):
    x_b = 2 * bp * kp * w_isz        # resident x (counted double-buffered)
    w_b = 2 * tk * tn * w_isz        # streamed weight tile, double-buffered
    b_b = 2 * tn * 4                 # bias tile
    o_b = 2 * bp * tn * out_isz      # output tile
    acc_b = 0 if collapsed else bp * tn * 4
    return x_b + w_b + b_b + o_b + acc_b


def _choose_tiles(bp, kp, np128, w_isz, out_isz, tn_cap, tk_cap, budget):
    preferred = _pick_tn(np128, tn_cap)
    tn_opts = [preferred] + [d for d in _tile_candidates(np128, tn_cap)
                             if d < preferred]
    for tn in tn_opts:
        # Collapsed-K preferred: no accumulator / per-K bookkeeping, x resident.
        if _vmem_bytes(bp, kp, kp, tn, w_isz, out_isz, True) <= budget:
            return tn, kp, True
        for tk in _tile_candidates(kp, tk_cap):
            if _vmem_bytes(bp, kp, tk, tn, w_isz, out_isz, False) <= budget:
                return tn, tk, False
    # Pathological fallback (very large bp): smallest tiles.
    return 128, 128, False


# ---------------------------------------------------------------------------
# Parameter preparation (run ONCE at init) and forward
# ---------------------------------------------------------------------------
def prepare_causal_head_params(weight, bias, *, compute_dtype=jnp.bfloat16):
    """Pad & cast (in_dim, n_classes) weight / bias once.

    compute_dtype=jnp.bfloat16 (default): MXU-native, halves weight HBM bytes.
    compute_dtype=jnp.float32 (or None -> f32): PyTorch-parity precision path.
    """
    in_dim, n_classes = weight.shape
    w_dtype = jnp.float32 if compute_dtype is None else compute_dtype
    kp = _round_up(in_dim, 128)
    np128 = _round_up(n_classes, 128)

    if (in_dim, n_classes) == (kp, np128) and weight.dtype == jnp.dtype(w_dtype):
        w_p = weight
    else:
        w_p = jnp.zeros((kp, np128), w_dtype).at[:in_dim, :n_classes].set(
            weight.astype(w_dtype))
    b_p = jnp.zeros((1, np128), jnp.float32).at[0, :n_classes].set(
        bias.astype(jnp.float32))

    return {"weight": w_p, "bias": b_p, "in_dim": in_dim,
            "n_classes": n_classes, "compute_dtype": w_dtype}


def causal_head_forward(x, params, *, tn_cap=2048, tk_cap=4096,
                        vmem_budget_bytes=40 * 1024 * 1024):
    """y = x @ weight + bias, using params from prepare_causal_head_params."""
    w_p, b_p = params["weight"], params["bias"]
    in_dim, n_classes = params["in_dim"], params["n_classes"]
    cdt = params["compute_dtype"]
    kp, np128 = w_p.shape
    B = x.shape[0]
    out_dtype = x.dtype

    # Decode-sized batch kept resident as a single M block so every weight
    # byte is streamed from HBM exactly once.
    bp = _round_up(max(B, 1), 16)

    x_p = x.astype(cdt)
    if (B, in_dim) != (bp, kp):
        x_p = jnp.zeros((bp, kp), cdt).at[:B, :in_dim].set(x_p)

    w_isz = jnp.dtype(cdt).itemsize
    out_isz = jnp.dtype(out_dtype).itemsize
    tn, tk, collapsed = _choose_tiles(bp, kp, np128, w_isz, out_isz,
                                      tn_cap, tk_cap, vmem_budget_bytes)

    used = _vmem_bytes(bp, kp, tk, tn, w_isz, out_isz, collapsed)
    # Explicit cap: overrides v5e's 16 MiB default scoped limit, stays well
    # inside v7x's 64 MiB per-TC VMEM.
    vmem_limit = int(min(max(used * 3 // 2, 16 * 1024 * 1024),
                         48 * 1024 * 1024))

    cost = pl.CostEstimate(
        flops=2 * bp * kp * np128,
        transcendentals=0,
        bytes_accessed=(bp * kp + kp * np128) * w_isz
        + np128 * 4 + bp * np128 * out_isz,
    )

    if collapsed:
        y_p = pl.pallas_call(
            _linear_kernel_flat,
            out_shape=jax.ShapeDtypeStruct((bp, np128), out_dtype),
            grid_spec=pltpu.PrefetchScalarGridSpec(
                num_scalar_prefetch=0,
                grid=(np128 // tn,),
                in_specs=[
                    pl.BlockSpec((bp, kp), lambda j: (0, 0)),   # x: resident
                    pl.BlockSpec((kp, tn), lambda j: (0, j)),   # W: streamed once
                    pl.BlockSpec((1, tn), lambda j: (0, j)),    # bias
                ],
                out_specs=pl.BlockSpec((bp, tn), lambda j: (0, j)),
            ),
            compiler_params=pltpu.CompilerParams(
                dimension_semantics=("parallel",),
                vmem_limit_bytes=vmem_limit,
            ),
            cost_estimate=cost,
        )(x_p, w_p, b_p)
    else:
        kernel = functools.partial(_linear_kernel_ktiled, tk=tk)
        y_p = pl.pallas_call(
            kernel,
            out_shape=jax.ShapeDtypeStruct((bp, np128), out_dtype),
            grid_spec=pltpu.PrefetchScalarGridSpec(
                num_scalar_prefetch=0,
                grid=(np128 // tn, kp // tk),
                in_specs=[
                    pl.BlockSpec((bp, kp), lambda j, k: (0, 0)),  # x: resident
                    pl.BlockSpec((tk, tn), lambda j, k: (k, j)),  # W: streamed once
                    pl.BlockSpec((1, tn), lambda j, k: (0, j)),   # bias
                ],
                out_specs=pl.BlockSpec((bp, tn), lambda j, k: (0, j)),
                scratch_shapes=[pltpu.VMEM((bp, tn), jnp.float32)],
            ),
            compiler_params=pltpu.CompilerParams(
                dimension_semantics=("parallel", "arbitrary"),
                vmem_limit_bytes=vmem_limit,
            ),
            cost_estimate=cost,
        )(x_p, w_p, b_p)

    return y_p[:B, :n_classes]


if __name__ == "__main__":
    n_classes = 10
    batch = 2
    in_dim = 32

    key = jax.random.PRNGKey(0)
    kx, kw, kb = jax.random.split(key, 3)

    # PyTorch nn.Linear default init: U(-1/sqrt(in_dim), 1/sqrt(in_dim)).
    bound = 1.0 / jnp.sqrt(jnp.float32(in_dim))
    w_pt = jax.random.uniform(kw, (n_classes, in_dim), jnp.float32, -bound, bound)
    weight = w_pt.T                                  # stored (in_dim, n_classes)
    bias = jax.random.uniform(kb, (n_classes,), jnp.float32, -bound, bound)
    x = jax.random.normal(kx, (batch, in_dim), jnp.float32)

    y_ref_bf16 = (jnp.dot(x.astype(jnp.bfloat16), weight.astype(jnp.bfloat16),
                          preferred_element_type=jnp.float32) + bias)
    y_ref_f32 = x @ weight + bias

    # 1) Default bf16 weight path (bandwidth-optimal) -> collapsed-K kernel.
    params_bf16 = prepare_causal_head_params(weight, bias)
    y = causal_head_forward(x, params_bf16)
    jax.block_until_ready(y)
    assert y.shape == (batch, n_classes)
    assert jnp.allclose(y, y_ref_bf16, atol=1e-5, rtol=1e-5)
    assert jnp.allclose(y, y_ref_f32, atol=3e-2, rtol=3e-2)

    # 2) f32 parity path (explicit opt-in).
    params_f32 = prepare_causal_head_params(weight, bias,
                                            compute_dtype=jnp.float32)
    y32 = causal_head_forward(x, params_f32)
    jax.block_until_ready(y32)
    assert y32.shape == (batch, n_classes)
    assert jnp.allclose(y32, y_ref_f32, atol=1.5e-2, rtol=1.5e-2)

    # 3) Exercise the K-tiled accumulator kernel by forcing a small VMEM budget
    #    on a slightly larger (still small) shape.
    in2, nc2, b2 = 256, 300, 3
    k2x, k2w, k2b = jax.random.split(jax.random.PRNGKey(1), 3)
    w2 = jax.random.normal(k2w, (in2, nc2), jnp.float32) * 0.02
    b2v = jax.random.normal(k2b, (nc2,), jnp.float32) * 0.02
    x2 = jax.random.normal(k2x, (b2, in2), jnp.float32)
    p2 = prepare_causal_head_params(w2, b2v)
    y2 = causal_head_forward(x2, p2, vmem_budget_bytes=600_000)
    jax.block_until_ready(y2)
    y2_ref = (jnp.dot(x2.astype(jnp.bfloat16), w2.astype(jnp.bfloat16),
                      preferred_element_type=jnp.float32) + b2v)
    assert y2.shape == (b2, nc2)
    assert jnp.allclose(y2, y2_ref, atol=1e-4, rtol=1e-4)

    print("KERNEL_OK")
</pallas_src>

<mosaic_0001>
module attributes {stable_mosaic.version = 11 : i64} {
  func.func @_linear_kernel_flat(%arg0: i32, %arg1: memref<16x128xbf16, #tpu.memory_space<vmem>>, %arg2: memref<128x128xbf16, #tpu.memory_space<vmem>>, %arg3: memref<1x128xf32, #tpu.memory_space<vmem>>, %arg4: memref<16x128xf32, #tpu.memory_space<vmem>>) attributes {dimension_semantics = [#tpu.dimension_semantics<parallel>], iteration_bounds = array<i64: 1>, scalar_prefetch = 0 : i64, scratch_operands = 0 : i64, tpu.core_type = #tpu.core_type<tc>, window_params = [{pipeline_mode = #tpu.pipeline_mode<synchronous>, transform_indices = @transform_0, window_bounds = array<i64: 16, 128>}, {transform_indices = @transform_1, window_bounds = array<i64: 128, 128>}, {transform_indices = @transform_2, window_bounds = array<i64: 1, 128>}, {transform_indices = @transform_3, window_bounds = array<i64: 16, 128>}]} {
    %c0 = arith.constant 0 : index
    %c0_0 = arith.constant 0 : index
    %0 = vector.load %arg1[%c0, %c0_0] : memref<16x128xbf16, #tpu.memory_space<vmem>>, vector<16x128xbf16>
    %c0_1 = arith.constant 0 : index
    %c0_2 = arith.constant 0 : index
    %1 = vector.load %arg2[%c0_1, %c0_2] : memref<128x128xbf16, #tpu.memory_space<vmem>>, vector<128x128xbf16>
    %cst = arith.constant dense<0.000000e+00> : vector<16x128xf32>
    %2 = tpu.matmul %0, %1, %cst {dimension_numbers = #tpu.dot_dimension_numbers<[1], [0], [0], [1], [0, 0, 1, 1], [], []>} : vector<16x128xbf16>, vector<128x128xbf16>, vector<16x128xf32> -> vector<16x128xf32>
    %c0_3 = arith.constant 0 : index
    %c0_4 = arith.constant 0 : index
    %3 = vector.load %arg3[%c0_3, %c0_4] : memref<1x128xf32, #tpu.memory_space<vmem>>, vector<1x128xf32>
    %4 = vector.broadcast %3 : vector<1x128xf32> to vector<16x128xf32>
    %5 = arith.addf %2, %4 : vector<16x128xf32>
    %c0_5 = arith.constant 0 : index
    %c0_6 = arith.constant 0 : index
    %6 = vector.load %arg4[%c0_5, %c0_6] : memref<16x128xf32, #tpu.memory_space<vmem>>, vector<16x128xf32>
    tpu.vector_store %arg4[%c0_5, %c0_6], %5 {strides = array<i32>} : memref<16x128xf32, #tpu.memory_space<vmem>>, vector<16x128xf32>,
    return
  }
  func.func @transform_0(%arg0: i32) -> (i32, i32) {
    %c0_i32 = arith.constant 0 : i32
    %c0_i32_0 = arith.constant 0 : i32
    %c0_i32_1 = arith.constant 0 : i32
    return %c0_i32, %c0_i32_0 : i32, i32
  }
  func.func @transform_1(%arg0: i32) -> (i32, i32) {
    %c0_i32 = arith.constant 0 : i32
    %c0_i32_0 = arith.constant 0 : i32
    return %c0_i32, %arg0 : i32, i32
  }
  func.func @transform_2(%arg0: i32) -> (i32, i32) {
    %c0_i32 = arith.constant 0 : i32
    %c0_i32_0 = arith.constant 0 : i32
    return %c0_i32, %arg0 : i32, i32
  }
  func.func @transform_3(%arg0: i32) -> (i32, i32) {
    %c0_i32 = arith.constant 0 : i32
    %c0_i32_0 = arith.constant 0 : i32
    return %c0_i32, %arg0 : i32, i32
  }
}

</mosaic_0001>

<bundles_post_ra>
// kernel: tpu_custom_call.1
= control target key start
LH: loop header
LB: loop body
LE: loop exit
PB: predicated region body
PF: predicated region fallthrough
CT: control target
= control target key end

     0   :  { %8 = vsyncpa [#allocation3], 0  ;;  %s381_s0 = inlined_call_operand.hbm [shape: bf16[16,128], index: 0, kind: input, shape index: {}]   ;;  %s382_s1 = inlined_call_operand.hbm [shape: bf16[128,128], index: 1, kind: input, shape index: {}]   ;;  %s383_s2 = inlined_call_operand.vmem [shape: f32[1,128], index: 2, kind: input, shape index: {}]   ;;  %s384_s3 = inlined_call_operand.hbm [shape: f32[16,128], index: 3, kind: output, shape index: {}]  }
   0x1   :  { %9 = vsyncpa [#allocation6], 0 }
   0x2   :  { %10 = vsyncpa [#allocation4], 0  ;;  %s313_s12 = smov [#allocation2]   ;;  %s241_s16 = scalar_lea.hbm %s381_s0, 128 }
   0x3   :  { %s16_s13 = sshll.u32 %s313_s12, 4  ;;  %p242_p0 = scmp.ne.s32.totalorder %s381_s0, %s241_s16  ;;  %s17_s13 = int_to_ptr.vmem [resolvable:$true] %s16_s13 }
   0x4   :  { %p245_p1 = scmp.lt.u32.totalorder %s241_s16, %s381_s0 }
   0x6   :  { %p247_p2 = pnand %p245_p1, %p242_p0 }
   0x8   :  { %250 = shalt.err (!%p247_p2)
}
   0x9   :  { %s251_s21 = scalar_lea.vmem %s17_s13, 128  ;;  %p256_p4 = scmp.lt.s32.totalorder %s17_s13, %s17_s13 }
   0xa   :  { %p252_p3 = scmp.ne.s32.totalorder %s17_s13, %s251_s21  ;;  %p257_p5 = scmp.lt.s32.totalorder %s251_s21, %s251_s21 }
   0xc   :  { %p258_p6 = por %p257_p5, %p256_p4 }
   0xe   :  { %p259_p7 = pnand %p258_p6, %p252_p3 }
  0x10   :  { %262 = shalt.err (!%p259_p7)
}
  0x11   :  { %s314_s22 = smov 64   ;;  %s315_s23 = smov 4  }
  0x12   :  { %22 = dma.hbm_to_vmem [thread:$0]  %s381_s0, 128, %s17_s13, [#allocation3], %s314_s22, %s314_s22, %s315_s23  }
  0x13   :  { %s316_s26 = smov [#allocation5]   ;;  %s263_s30 = scalar_lea.hbm %s382_s1, 1024 }
  0x14   :  { %s28_s27 = sshll.u32 %s316_s26, 4  ;;  %p264_p8 = scmp.ne.s32.totalorder %s382_s1, %s263_s30  ;;  %s29_s27 = int_to_ptr.vmem [resolvable:$true] %s28_s27 }
  0x15   :  { %p267_p9 = scmp.lt.u32.totalorder %s263_s30, %s382_s1 }
  0x17   :  { %p269_p10 = pnand %p267_p9, %p264_p8 }
  0x19   :  { %272 = shalt.err (!%p269_p10)
}
  0x1a   :  { %s273_s8 = scalar_lea.vmem %s29_s27, 1024  ;;  %p278_p12 = scmp.lt.s32.totalorder %s29_s27, %s29_s27 }
  0x1b   :  { %p274_p11 = scmp.ne.s32.totalorder %s29_s27, %s273_s8  ;;  %p279_p13 = scmp.lt.s32.totalorder %s273_s8, %s273_s8 }
  0x1d   :  { %p280_p0 = por %p279_p13, %p278_p12 }
  0x1f   :  { %p281_p1 = pnand %p280_p0, %p274_p11 }
  0x21   :  { %284 = shalt.err (!%p281_p1)
}
  0x22   :  { %34 = dma.hbm_to_vmem [thread:$0]  %s382_s1, 1024, %s29_s27, [#allocation6], %s314_s22, %s314_s22, %s315_s23  }
  0x23   :  { %307 = dma.done.wait [#allocation3], 128  }
  0x24   :  { %308 = vsyncadd [#allocation3], 4294967168 }
  0x25   :  { %309 = dma.done.wait [#allocation6], 1024  }
  0x26   :  { %310 = vsyncadd [#allocation6], 4294966272  ;;  %v317_v0 = vmov 0.0   ;;  %vm318_vm0 = vmmov 0   ;;  %v232_v1 = vld [vmem:[#allocation5] sm:$0xff]   ;;  %v233_v2 = vld [vmem:[#allocation5 + $0x8] sm:$0xff]  }
  0x27   :  { %203 = vmatprep.subr.bf16.mxu0 %v317_v0  ;;  %219 = vmatprep.mubr.msk.bf16.mxu0 %vm318_vm0, %v317_v0  ;;  %v234_v3 = vld [vmem:[#allocation5 + $0x10] sm:$0xff]   ;;  %v235_v4 = vld [vmem:[#allocation5 + $0x18] sm:$0xff]   ;;  %v236_v5 = vld [vmem:[#allocation5 + $0x20] sm:$0xff]   ;;  %s319_s11 = smov [#allocation7]  }
  0x28   :  { %204 = vmatpush3.bf16.msra.mxu0 %v232_v1  ;;  %v237_v6 = vld [vmem:[#allocation5 + $0x28] sm:$0xff]   ;;  %v238_v7 = vld [vmem:[#allocation5 + $0x30] sm:$0xff]   ;;  %v239_v8 = vld [vmem:[#allocation5 + $0x38] sm:$0xff]   ;;  %s171_s12 = sshll.u32 %s319_s11, 4  ;;  %s172_s12 = int_to_ptr.vmem [resolvable:$true] %s171_s12 }
  0x29   :  { %205 = vmatprep.subr.bf16.mxu0 %v317_v0  ;;  %v240_v9 = vld [vmem:[#allocation2] sm:$0xff]   ;;  %s285_s13 = scalar_lea.vmem %s172_s12, 256  ;;  %p290_p3 = scmp.lt.s32.totalorder %s172_s12, %s172_s12 }
  0x2a   :  { %v184_v10 = vld [vmem:[%s383_s2] ss:$0 sm:$0xff]  ;;  %p286_p2 = scmp.ne.s32.totalorder %s172_s12, %s285_s13  ;;  %p291_p4 = scmp.lt.s32.totalorder %s285_s13, %s285_s13 }
  0x2c   :  { %206 = vmatpush3.bf16.msra.mxu0 %v233_v2  ;;  %p292_p5 = por %p291_p4, %p290_p3 }
  0x2d   :  { %207 = vmatprep.subr.bf16.mxu0 %v317_v0 }
  0x2e   :  { %p293_p6 = pnand %p292_p5, %p286_p2 }
  0x30   :  { %208 = vmatpush3.bf16.msra.mxu0 %v234_v3 }
  0x31   :  { %209 = vmatprep.subr.bf16.mxu0 %v317_v0 }
  0x34   :  { %210 = vmatpush3.bf16.msra.mxu0 %v235_v4 }
  0x35   :  { %211 = vmatprep.subr.bf16.mxu0 %v317_v0 }
  0x38   :  { %212 = vmatpush3.bf16.msra.mxu0 %v236_v5 }
  0x39   :  { %213 = vmatprep.subr.bf16.mxu0 %v317_v0 }
  0x3c   :  { %214 = vmatpush3.bf16.msra.mxu0 %v237_v6 }
  0x3d   :  { %215 = vmatprep.subr.bf16.mxu0 %v317_v0 }
  0x40   :  { %216 = vmatpush3.bf16.msra.mxu0 %v238_v7 }
  0x41   :  { %217 = vmatprep.subr.bf16.mxu0 %v317_v0 }
  0x44   :  { %218 = vmatpush3.bf16.msra.mxu0 %v239_v8 }
  0x47   :  { %220 = vmatmul.mubr.bf16.vlgmr.msra.gmra.mrb[0].mxu0 %v240_v9 }
 0x11a   :  { %v157_v11 = vpop.f32.mrb[0].mxu0 }
 0x11b   :  { %v158_v12 = vadd.f32 %v184_v10, %v157_v11  ;;  %v221_v13 = vpop.f32.mrb[1].mxu0 }
 0x11c   :  { %v160_v14 = vpop.f32.mrb[2].mxu0 }
 0x11d   :  { %164 = vst [vmem:[#allocation7] sm:$0xff] %v158_v12  ;;  %v161_v15 = vadd.f32 %v184_v10, %v160_v14  ;;  %v222_v16 = vpop.f32.mrb[3].mxu0 }
 0x11f   :  { %165 = vst [vmem:[#allocation7 + $0x8] sm:$0xff] %v161_v15 }
 0x120   :  { %296 = shalt.err (!%p293_p6)
}
 0x121   :  { %s297_s15 = scalar_lea.hbm %s384_s3, 256 }
 0x122   :  { %p298_p7 = scmp.ne.s32.totalorder %s384_s3, %s297_s15  ;;  %p301_p8 = scmp.lt.u32.totalorder %s297_s15, %s384_s3 }
 0x124   :  { %p303_p9 = pnand %p301_p8, %p298_p7 }
 0x126   :  { %306 = shalt.err (!%p303_p9)
}
 0x127   :  { %s320_s20 = smov 128   ;;  %s321_s21 = smov 8  }
 0x128   :  { %177 = dma.vmem_to_hbm [thread:$0]  %s172_s12, 256, %s384_s3, [#allocation4], %s320_s20, %s320_s20, %s321_s21  }
 0x129   :  { %311 = dma.done.wait [#allocation4], 256  }
 0x12a   :  { %312 = vsyncadd [#allocation4], 4294967040 }
 0x12b   :  { %181 = vsyncpa [#allocation3], 1 }
 0x12c   :  { %182 = vsyncpa [#allocation6], 1 }
 0x12d   :  { %183 = vsyncpa [#allocation4], 1 }

</bundles_post_ra>
